<compile_context>
chip_gen: v7x
topology: tpu7x:2x2x1
jax: 0.10.0
libtpu: 0.0.40
codegen_flags: <defaults>
</compile_context>

<pallas_src>
import functools

import jax
import jax.numpy as jnp
from jax.experimental import pallas as pl
from jax.experimental.pallas import tpu as pltpu

LANE = 128
SUBLANE = 8


def _round_up(x, m):
    return ((x + m - 1) // m) * m


# --------------------------------------------------------------------------
# Kernel: fused fc1 -> sigmoid -> fc2 with an optional hidden-dim reduction
# grid axis (axis 1).  acc_ref is an f32 VMEM accumulator for the fc2 logits.
# --------------------------------------------------------------------------
def _mlp_kernel(x_ref, w1_ref, b1_ref, w2_ref, b2_ref, o_ref, acc_ref):
    # x_ref : (bb, E)  f32      w1_ref: (E, hk)  bf16    b1_ref: (1, hk)  f32
    # w2_ref: (hk, Cp) bf16     b2_ref: (1, Cp)  f32     o_ref : (bb, Cp) bf16
    # acc_ref: (bb, Cp) f32 scratch (persists across the hidden-reduction axis)
    k = pl.program_id(1)

    @pl.when(k == 0)
    def _():
        acc_ref[...] = jnp.zeros_like(acc_ref)

    # In-kernel VPU cast f32 -> bf16: hides under DMA/MXU, avoids a wrapper
    # cast that would cost an extra HBM pass over x.
    xb = x_ref[...].astype(w1_ref.dtype)
    h = jnp.dot(xb, w1_ref[...], preferred_element_type=jnp.float32)
    h = jax.nn.sigmoid(h + b1_ref[...])                       # VPU + EUP
    acc_ref[...] += jnp.dot(h.astype(w2_ref.dtype), w2_ref[...],
                            preferred_element_type=jnp.float32)

    @pl.when(k == pl.num_programs(1) - 1)
    def _():
        o_ref[...] = (acc_ref[...] + b2_ref[...]).astype(o_ref.dtype)


# --------------------------------------------------------------------------
# Generation-aware tiling / VMEM policy.
# --------------------------------------------------------------------------
@functools.lru_cache(maxsize=1)
def _tpu_target():
    """Returns (physical_vmem_bytes_per_core, num_tensorcores_per_chip)."""
    vmem_cap = None
    try:
        vmem_cap = int(pltpu.get_tpu_info().vmem_capacity_bytes)
    except Exception:
        vmem_cap = None
    kind = ""
    try:
        kind = str(jax.devices()[0].device_kind).lower()
    except Exception:
        kind = ""
    # v7x: 2 TensorCores per chip, 64 MiB VMEM per core. v5e/v6e: 1 TC, 128 MiB.
    is_v7 = ("v7" in kind) or ("tpu7" in kind) or ("7x" in kind) or (
        vmem_cap is not None and vmem_cap <= (64 << 20))
    if vmem_cap is None:
        vmem_cap = (64 << 20) if is_v7 else (128 << 20)
    num_tc = 2 if is_v7 else 1
    return vmem_cap, num_tc


def _legal_bb(bb, B):
    """Batch tile that satisfies the sublane rule (multiple of 8 or == B)."""
    bb = max(1, min(int(bb), B))
    if bb == B:
        return B
    bb = (bb // SUBLANE) * SUBLANE
    return bb if bb >= SUBLANE else B


def _choose_config(B, E, H, Cp, block_b=None):
    """Pick (batch tile, hidden tile, vmem_limit) for the current TPU gen."""
    vmem_cap, num_tc = _tpu_target()
    budget = min(vmem_cap // 2, 64 << 20)        # ~32 MiB on v7x, 64 MiB v5e/v6e

    def weight_step_bytes(hk):
        # bf16 weight tiles + f32 bias tiles, double-buffered by the pipeline.
        # TODO(synk): pin constant-index weight blocks to a single buffer via
        # pipeline_mode=pl.Buffered(1) once verified on the target jax build.
        return 2 * ((E * hk + hk * Cp) * 2 + (hk + Cp) * 4)

    # Hidden (reduction) tile: keep full H unless resident weights blow the
    # budget; only tile when H is cleanly divisible (keeps padded-K garbage
    # out of the accumulation).
    hk = H
    if H % LANE == 0:
        while hk > LANE and weight_step_bytes(hk) > budget // 2:
            nxt = hk // 2
            if nxt % LANE != 0 or H % nxt != 0:
                break
            hk = nxt

    def step_bytes(bb):
        return (2 * bb * E * 4            # x tile (f32 in, double-buffered)
                + 2 * bb * Cp * 2         # bf16 padded output tile (double-buffered)
                + bb * Cp * 4             # f32 accumulator scratch
                + 2 * bb * hk * 4         # live hidden-activation headroom
                + weight_step_bytes(hk))

    if block_b is not None:
        bb = _legal_bb(block_b, B)
    else:
        # v5e/v6e: fewest grid steps (1 if possible).  v7x: even >=2-way split
        # so both TensorCores get balanced work under "parallel".
        n = num_tc
        bb = _legal_bb(pl.cdiv(B, n), B)
        while step_bytes(bb) > budget and bb > SUBLANE:
            n += num_tc
            nb = _legal_bb(pl.cdiv(B, n), B)
            if nb >= bb:
                break
            bb = nb

    vmem_limit = int(min(max(2 * step_bytes(bb), 16 << 20), budget))
    return bb, hk, vmem_limit


# --------------------------------------------------------------------------
# Jitted forward (pallas_call + slice/cast fused in one jit).
# --------------------------------------------------------------------------
@functools.partial(jax.jit, static_argnames=("cls_num", "bb", "hk", "vmem_limit"))
def _forward_jit(x, w1, b1, w2p, b2p, *, cls_num, bb, hk, vmem_limit):
    B, E = x.shape
    H = w1.shape[1]
    Cp = w2p.shape[1]
    num_b = pl.cdiv(B, bb)
    num_h = pl.cdiv(H, hk)

    weight_bytes = (E * H + H * Cp) * 2 + (H + Cp) * 4
    cost = pl.CostEstimate(
        flops=2 * B * E * H + 2 * B * H * Cp,
        transcendentals=B * H,
        bytes_accessed=(B * E * 4                              # x (f32)
                        + (1 if num_h == 1 else num_b) * weight_bytes
                        + B * Cp * 2),                         # padded bf16 out
    )

    out_padded = pl.pallas_call(
        _mlp_kernel,
        out_shape=jax.ShapeDtypeStruct((B, Cp), jnp.bfloat16),
        grid_spec=pl.GridSpec(
            grid=(num_b, num_h),
            in_specs=[
                pl.BlockSpec((bb, E), lambda i, k: (i, 0)),    # x tile (batch)
                pl.BlockSpec((E, hk), lambda i, k: (0, k)),    # fc1 weight tile
                pl.BlockSpec((1, hk), lambda i, k: (0, k)),    # fc1 bias tile
                pl.BlockSpec((hk, Cp), lambda i, k: (k, 0)),   # fc2 weight tile (padded)
                pl.BlockSpec((1, Cp), lambda i, k: (0, 0)),    # fc2 bias (padded)
            ],
            out_specs=pl.BlockSpec((bb, Cp), lambda i, k: (i, 0)),
            scratch_shapes=(pltpu.VMEM((bb, Cp), jnp.float32),),
        ),
        compiler_params=pltpu.CompilerParams(
            dimension_semantics=("parallel", "arbitrary"),
            vmem_limit_bytes=vmem_limit,
        ),
        cost_estimate=cost,
    )(x, w1, b1, w2p, b2p)

    # Slice off the padding and return f32 logits (torch-equivalent interface).
    return out_padded[:, :cls_num].astype(jnp.float32)


def nonlinear_classifier_forward(x, params, *, block_b=None):
    """x: (B, E) float32; params from prepare_params(); returns (B, cls_num) f32."""
    w1, b1, w2p, b2p = params["w1"], params["b1"], params["w2"], params["b2"]
    cls_num = params["cls_num"]
    B, E = x.shape
    H = w1.shape[1]
    Cp = w2p.shape[1]
    bb, hk, vmem_limit = _choose_config(B, E, H, Cp, block_b)
    return _forward_jit(x, w1, b1, w2p, b2p,
                        cls_num=cls_num, bb=bb, hk=hk, vmem_limit=vmem_limit)


# --------------------------------------------------------------------------
# One-time parameter preparation (cast + lane-pad constants once, not per call).
# --------------------------------------------------------------------------
def prepare_params(w1, b1, w2, b2, compute_dtype=jnp.bfloat16):
    E, H = w1.shape
    C = w2.shape[-1]
    Cp = _round_up(C, LANE)
    w1c = jnp.asarray(w1, compute_dtype)
    b1c = jnp.asarray(b1, jnp.float32).reshape(1, H)
    w2p = jnp.zeros((H, Cp), compute_dtype).at[:, :C].set(
        jnp.asarray(w2, compute_dtype))
    b2p = jnp.zeros((1, Cp), jnp.float32).at[:, :C].set(
        jnp.asarray(b2, jnp.float32).reshape(1, C))
    return {"w1": w1c, "b1": b1c, "w2": w2p, "b2": b2p, "cls_num": C}


def init_params(key, embedding_size, hidden_size, cls_num=2):
    """torch.nn.Linear-style U[-1/sqrt(fan_in), +] init; weights stored (in, out)."""
    k1, k2, k3, k4 = jax.random.split(key, 4)
    bound1 = 1.0 / jnp.sqrt(embedding_size)
    bound2 = 1.0 / jnp.sqrt(hidden_size)
    w1 = jax.random.uniform(k1, (embedding_size, hidden_size),
                            minval=-bound1, maxval=bound1, dtype=jnp.float32)
    b1 = jax.random.uniform(k2, (hidden_size,),
                            minval=-bound1, maxval=bound1, dtype=jnp.float32)
    w2 = jax.random.uniform(k3, (hidden_size, cls_num),
                            minval=-bound2, maxval=bound2, dtype=jnp.float32)
    b2 = jax.random.uniform(k4, (cls_num,),
                            minval=-bound2, maxval=bound2, dtype=jnp.float32)
    return w1, b1, w2, b2


def reference_forward(x, w1, b1, w2, b2, compute_dtype=jnp.float32,
                      round_output=False):
    """Pure-JAX reference; compute_dtype / round_output mirror the kernel."""
    h = jax.nn.sigmoid(
        jnp.dot(x.astype(compute_dtype), w1.astype(compute_dtype),
                preferred_element_type=jnp.float32)
        + b1.reshape(1, -1).astype(jnp.float32))
    out = (jnp.dot(h.astype(compute_dtype), w2.astype(compute_dtype),
                   preferred_element_type=jnp.float32)
           + b2.reshape(1, -1).astype(jnp.float32))
    if round_output:
        out = out.astype(jnp.bfloat16).astype(jnp.float32)
    return out


if __name__ == "__main__":
    key = jax.random.PRNGKey(0)
    kx, kp = jax.random.split(key)

    batch = 128            # module's BATCH_SIZE
    embedding_size = 64
    hidden_size = 128
    cls_num = 2

    x = jax.random.normal(kx, (batch, embedding_size), dtype=jnp.float32)
    w1, b1, w2, b2 = init_params(kp, embedding_size, hidden_size, cls_num)
    params = prepare_params(w1, b1, w2, b2)    # one-time cast + pad

    out = nonlinear_classifier_forward(x, params)   # auto bb: 1 step v5e/v6e, 2 on v7x
    out = jax.block_until_ready(out)
    assert out.shape == (batch, cls_num)
    assert out.dtype == jnp.float32

    # Tight check vs a reference with matching bf16 operand casting + bf16 store.
    ref_bf16 = reference_forward(x, w1, b1, w2, b2,
                                 compute_dtype=jnp.bfloat16, round_output=True)
    assert jnp.allclose(out, ref_bf16, atol=1e-2, rtol=1e-2), \
        "mismatch vs bf16-matched reference"

    # Looser check vs the full-f32 PyTorch-equivalent reference.
    ref_f32 = reference_forward(x, w1, b1, w2, b2)
    assert jnp.allclose(out, ref_f32, atol=5e-2, rtol=5e-2), \
        "mismatch vs f32 reference"

    print("KERNEL_OK")
</pallas_src>

<mosaic_0001>
module attributes {stable_mosaic.version = 11 : i64} {
  func.func @_mlp_kernel(%arg0: i32, %arg1: i32, %arg2: memref<128x64xf32, #tpu.memory_space<vmem>>, %arg3: memref<64x128xbf16, #tpu.memory_space<vmem>>, %arg4: memref<1x128xf32, #tpu.memory_space<vmem>>, %arg5: memref<128x128xbf16, #tpu.memory_space<vmem>>, %arg6: memref<1x128xf32, #tpu.memory_space<vmem>>, %arg7: memref<128x128xbf16, #tpu.memory_space<vmem>>, %arg8: memref<128x128xf32, #tpu.memory_space<vmem>>) attributes {dimension_semantics = [#tpu.dimension_semantics<parallel>, #tpu.dimension_semantics<arbitrary>], iteration_bounds = array<i64: 1, 1>, scalar_prefetch = 0 : i64, scratch_operands = 1 : i64, tpu.core_type = #tpu.core_type<tc>, window_params = [{transform_indices = @transform_0, window_bounds = array<i64: 128, 64>}, {transform_indices = @transform_1, window_bounds = array<i64: 64, 128>}, {transform_indices = @transform_2, window_bounds = array<i64: 1, 128>}, {transform_indices = @transform_3, window_bounds = array<i64: 128, 128>}, {pipeline_mode = #tpu.pipeline_mode<synchronous>, transform_indices = @transform_4, window_bounds = array<i64: 1, 128>}, {transform_indices = @transform_5, window_bounds = array<i64: 128, 128>}]} {
    %c0_i32 = arith.constant 0 : i32
    %0 = arith.cmpi eq, %arg1, %c0_i32 : i32
    %1 = arith.extui %0 : i1 to i32
    %c0_i32_0 = arith.constant 0 : i32
    %2 = arith.cmpi ne, %1, %c0_i32_0 : i32
    scf.if %2 {
      %cst_16 = arith.constant 0.000000e+00 : f32
      %24 = vector.broadcast %cst_16 : f32 to vector<128x128xf32>
      %c0_17 = arith.constant 0 : index
      %c0_18 = arith.constant 0 : index
      %25 = vector.load %arg8[%c0_17, %c0_18] : memref<128x128xf32, #tpu.memory_space<vmem>>, vector<128x128xf32>
      tpu.vector_store %arg8[%c0_17, %c0_18], %24 {strides = array<i32>} : memref<128x128xf32, #tpu.memory_space<vmem>>, vector<128x128xf32>,
    } else {
    }
    %c0 = arith.constant 0 : index
    %c0_1 = arith.constant 0 : index
    %3 = vector.load %arg2[%c0, %c0_1] : memref<128x64xf32, #tpu.memory_space<vmem>>, vector<128x64xf32>
    %4 = arith.truncf %3 : vector<128x64xf32> to vector<128x64xbf16>
    %c0_2 = arith.constant 0 : index
    %c0_3 = arith.constant 0 : index
    %5 = vector.load %arg3[%c0_2, %c0_3] : memref<64x128xbf16, #tpu.memory_space<vmem>>, vector<64x128xbf16>
    %cst = arith.constant dense<0.000000e+00> : vector<128x128xf32>
    %6 = tpu.matmul %4, %5, %cst {dimension_numbers = #tpu.dot_dimension_numbers<[1], [0], [0], [1], [0, 0, 1, 1], [], []>} : vector<128x64xbf16>, vector<64x128xbf16>, vector<128x128xf32> -> vector<128x128xf32>
    %c0_4 = arith.constant 0 : index
    %c0_5 = arith.constant 0 : index
    %7 = vector.load %arg4[%c0_4, %c0_5] : memref<1x128xf32, #tpu.memory_space<vmem>>, vector<1x128xf32>
    %8 = vector.broadcast %7 : vector<1x128xf32> to vector<128x128xf32>
    %9 = arith.addf %6, %8 : vector<128x128xf32>
    %10 = arith.negf %9 : vector<128x128xf32>
    %11 = math.exp %10 : vector<128x128xf32>
    %cst_6 = arith.constant 1.000000e+00 : f32
    %12 = vector.broadcast %cst_6 : f32 to vector<128x128xf32>
    %13 = arith.addf %12, %11 : vector<128x128xf32>
    %14 = arith.divf %12, %13 : vector<128x128xf32>
    %c0_7 = arith.constant 0 : index
    %c0_8 = arith.constant 0 : index
    %15 = vector.load %arg8[%c0_7, %c0_8] : memref<128x128xf32, #tpu.memory_space<vmem>>, vector<128x128xf32>
    %16 = arith.truncf %14 : vector<128x128xf32> to vector<128x128xbf16>
    %c0_9 = arith.constant 0 : index
    %c0_10 = arith.constant 0 : index
    %17 = vector.load %arg5[%c0_9, %c0_10] : memref<128x128xbf16, #tpu.memory_space<vmem>>, vector<128x128xbf16>
    %cst_11 = arith.constant dense<0.000000e+00> : vector<128x128xf32>
    %18 = tpu.matmul %16, %17, %cst_11 {dimension_numbers = #tpu.dot_dimension_numbers<[1], [0], [0], [1], [0, 0, 1, 1], [], []>} : vector<128x128xbf16>, vector<128x128xbf16>, vector<128x128xf32> -> vector<128x128xf32>
    %19 = arith.addf %15, %18 : vector<128x128xf32>
    %c0_12 = arith.constant 0 : index
    %c0_13 = arith.constant 0 : index
    %20 = vector.load %arg8[%c0_12, %c0_13] : memref<128x128xf32, #tpu.memory_space<vmem>>, vector<128x128xf32>
    tpu.vector_store %arg8[%c0_12, %c0_13], %19 {strides = array<i32>} : memref<128x128xf32, #tpu.memory_space<vmem>>, vector<128x128xf32>,
    %c0_i32_14 = arith.constant 0 : i32
    %21 = arith.cmpi eq, %arg1, %c0_i32_14 : i32
    %22 = arith.extui %21 : i1 to i32
    %c0_i32_15 = arith.constant 0 : i32
    %23 = arith.cmpi ne, %22, %c0_i32_15 : i32
    scf.if %23 {
      %c0_16 = arith.constant 0 : index
      %c0_17 = arith.constant 0 : index
      %24 = vector.load %arg8[%c0_16, %c0_17] : memref<128x128xf32, #tpu.memory_space<vmem>>, vector<128x128xf32>
      %c0_18 = arith.constant 0 : index
      %c0_19 = arith.constant 0 : index
      %25 = vector.load %arg6[%c0_18, %c0_19] : memref<1x128xf32, #tpu.memory_space<vmem>>, vector<1x128xf32>
      %26 = vector.broadcast %25 : vector<1x128xf32> to vector<128x128xf32>
      %27 = arith.addf %24, %26 : vector<128x128xf32>
      %28 = arith.truncf %27 : vector<128x128xf32> to vector<128x128xbf16>
      %c0_20 = arith.constant 0 : index
      %c0_21 = arith.constant 0 : index
      %29 = vector.load %arg7[%c0_20, %c0_21] : memref<128x128xbf16, #tpu.memory_space<vmem>>, vector<128x128xbf16>
      tpu.vector_store %arg7[%c0_20, %c0_21], %28 {strides = array<i32>} : memref<128x128xbf16, #tpu.memory_space<vmem>>, vector<128x128xbf16>,
    } else {
    }
    return
  }
  func.func @transform_0(%arg0: i32, %arg1: i32) -> (i32, i32) {
    %c0_i32 = arith.constant 0 : i32
    %c0_i32_0 = arith.constant 0 : i32
    return %arg0, %c0_i32 : i32, i32
  }
  func.func @transform_1(%arg0: i32, %arg1: i32) -> (i32, i32) {
    %c0_i32 = arith.constant 0 : i32
    %c0_i32_0 = arith.constant 0 : i32
    return %c0_i32, %arg1 : i32, i32
  }
  func.func @transform_2(%arg0: i32, %arg1: i32) -> (i32, i32) {
    %c0_i32 = arith.constant 0 : i32
    %c0_i32_0 = arith.constant 0 : i32
    return %c0_i32, %arg1 : i32, i32
  }
  func.func @transform_3(%arg0: i32, %arg1: i32) -> (i32, i32) {
    %c0_i32 = arith.constant 0 : i32
    %c0_i32_0 = arith.constant 0 : i32
    return %arg1, %c0_i32 : i32, i32
  }
  func.func @transform_4(%arg0: i32, %arg1: i32) -> (i32, i32) {
    %c0_i32 = arith.constant 0 : i32
    %c0_i32_0 = arith.constant 0 : i32
    %c0_i32_1 = arith.constant 0 : i32
    return %c0_i32, %c0_i32_0 : i32, i32
  }
  func.func @transform_5(%arg0: i32, %arg1: i32) -> (i32, i32) {
    %c0_i32 = arith.constant 0 : i32
    %c0_i32_0 = arith.constant 0 : i32
    return %arg0, %c0_i32 : i32, i32
  }
}

</mosaic_0001>

<bundles_post_ra>
// kernel: _forward_jit.1
= control target key start
LH: loop header
LB: loop body
LE: loop exit
PB: predicated region body
PF: predicated region fallthrough
CT: control target
= control target key end

     0   :  { %vm104_vm0 = vcmask 523264   ;;  %s1128_s1 = inlined_call_operand.vmem [shape: bf16[64,128], index: 1, kind: input, shape index: {}]   ;;  %s1129_s0 = inlined_call_operand.vmem [shape: f32[128,64], index: 0, kind: input, shape index: {}]   ;;  %s1130_s3 = inlined_call_operand.vmem [shape: bf16[128,128], index: 3, kind: input, shape index: {}]   ;;  %s1131_s2 = inlined_call_operand.vmem [shape: f32[1,128], index: 2, kind: input, shape index: {}]   ;;  %s1132_s4 = inlined_call_operand.vmem [shape: f32[1,128], index: 4, kind: input, shape index: {}]   ;;  %s1133_s5 = inlined_call_operand.vmem [shape: bf16[128,128], index: 5, kind: output, shape index: {}]  }
   0x1   :  { %v882_v0 = vld [vmem:[%s1128_s1] sm:$0xff]   ;;  %v883_v1 = vld [vmem:[%s1128_s1 + $0x8] sm:$0xff]   ;;  %v884_v2 = vld [vmem:[%s1128_s1 + $0x10] sm:$0xff]  }
   0x2   :  { %810 = vmatprep.subr.bf16.mxu0 %v882_v0  ;;  %v41_v3 = vld [vmem:[%s1129_s0] sm:$0xff]  ;;  %v42_v4 = vld [vmem:[%s1129_s0 + $0x8] sm:$0xff]  ;;  %v885_v6 = vld [vmem:[%s1128_s1 + $0x18] sm:$0xff]  }
   0x3   :  { %811 = vmatpush3.bf16.msra.mxu0 %v882_v0  ;;  %v57_v5 = vpack.c.bf16 %v42_v4, %v41_v3  ;;  %v43_v7 = vld [vmem:[%s1129_s0 + $0x10] sm:$0xff]  ;;  %v44_v8 = vld [vmem:[%s1129_s0 + $0x18] sm:$0xff]  ;;  %v45_v9 = vld [vmem:[%s1129_s0 + $0x20] sm:$0xff] }
   0x4   :  { %812 = vmatprep.subr.bf16.mxu0 %v883_v1  ;;  %v46_v10 = vld [vmem:[%s1129_s0 + $0x28] sm:$0xff]  ;;  %v58_v11 = vpack.c.bf16 %v44_v8, %v43_v7  ;;  %v47_v13 = vld [vmem:[%s1129_s0 + $0x30] sm:$0xff]  ;;  %v48_v14 = vld [vmem:[%s1129_s0 + $0x38] sm:$0xff] }
   0x5   :  { %818 = vmatprep.mubr.msk.bf16.mxu0 %vm104_vm0, %v57_v5  ;;  %v59_v12 = vpack.c.bf16 %v46_v10, %v45_v9  ;;  %v49_v15 = vld [vmem:[%s1129_s0 + $0x40] sm:$0xff]  ;;  %v50_v16 = vld [vmem:[%s1129_s0 + $0x48] sm:$0xff]  ;;  %v60_v17 = vpack.c.bf16 %v48_v14, %v47_v13  ;;  %v51_v19 = vld [vmem:[%s1129_s0 + $0x50] sm:$0xff] }
   0x6   :  { %v61_v18 = vpack.c.bf16 %v50_v16, %v49_v15  ;;  %v52_v20 = vld [vmem:[%s1129_s0 + $0x58] sm:$0xff]  ;;  %v53_v21 = vld [vmem:[%s1129_s0 + $0x60] sm:$0xff]  ;;  %v54_v22 = vld [vmem:[%s1129_s0 + $0x68] sm:$0xff] }
   0x7   :  { %813 = vmatpush3.bf16.msra.mxu0 %v883_v1  ;;  %v62_v23 = vpack.c.bf16 %v52_v20, %v51_v19  ;;  %v63_v24 = vpack.c.bf16 %v54_v22, %v53_v21  ;;  %v55_v25 = vld [vmem:[%s1129_s0 + $0x70] sm:$0xff]  ;;  %v56_v26 = vld [vmem:[%s1129_s0 + $0x78] sm:$0xff]  ;;  %v886_v28 = vld [vmem:[%s1130_s3] sm:$0xff]  }
   0x8   :  { %814 = vmatprep.subr.bf16.mxu0 %v884_v2  ;;  %v64_v27 = vpack.c.bf16 %v56_v26, %v55_v25  ;;  %866 = vmatprep.subr.bf16.mxu1 %v886_v28  ;;  %v887_v29 = vld [vmem:[%s1130_s3 + $0x8] sm:$0xff]   ;;  %v888_v30 = vld [vmem:[%s1130_s3 + $0x10] sm:$0xff]   ;;  %v889_v31 = vld [vmem:[%s1130_s3 + $0x18] sm:$0xff]  }
   0x9   :  { %874 = vmatpush3.bf16.msra.mxu1 %v886_v28  ;;  %v890_v32 = vld [vmem:[%s1130_s3 + $0x20] sm:$0xff]   ;;  %v891_v33 = vld [vmem:[%s1130_s3 + $0x28] sm:$0xff]   ;;  %v892_v34 = vld [vmem:[%s1130_s3 + $0x30] sm:$0xff]  }
   0xa   :  { %867 = vmatprep.subr.bf16.mxu1 %v887_v29  ;;  %v893_v35 = vld [vmem:[%s1130_s3 + $0x38] sm:$0xff]   ;;  %v1083_v36 = vld [vmem:[%s1131_s2] ss:$0 sm:$0xff] }
   0xb   :  { %815 = vmatpush3.bf16.msra.mxu0 %v884_v2 }
   0xc   :  { %816 = vmatprep.subr.bf16.mxu0 %v885_v6 }
   0xd   :  { %875 = vmatpush3.bf16.msra.mxu1 %v887_v29 }
   0xe   :  { %868 = vmatprep.subr.bf16.mxu1 %v888_v30 }
   0xf   :  { %817 = vmatpush3.bf16.msra.mxu0 %v885_v6 }
  0x10   :  { %834 = vmatprep.subr.bf16.mxu0 %v886_v28 }
  0x11   :  { %876 = vmatpush3.bf16.msra.mxu1 %v888_v30 }
  0x12   :  { %819 = vmatmul.mubr.msk.bf16.vlgmr.msra.gmra.mrb[0].mxu0 %vm104_vm0, %v58_v11  ;;  %869 = vmatprep.subr.bf16.mxu1 %v889_v31 }
  0x13   :  { %822 = vmatprep.mubr.msk.bf16.mxu0 %vm104_vm0, %v59_v12  ;;  %835 = vmatpush3.bf16.msra.mxu0 %v886_v28 }
  0x14   :  { %836 = vmatprep.subr.bf16.mxu0 %v887_v29 }
  0x15   :  { %877 = vmatpush3.bf16.msra.mxu1 %v889_v31 }
  0x16   :  { %870 = vmatprep.subr.bf16.mxu1 %v890_v32 }
  0x17   :  { %837 = vmatpush3.bf16.msra.mxu0 %v887_v29 }
  0x18   :  { %838 = vmatprep.subr.bf16.mxu0 %v888_v30 }
  0x19   :  { %878 = vmatpush3.bf16.msra.mxu1 %v890_v32 }
  0x1a   :  { %823 = vmatmul.mubr.msk.bf16.gmra.mrb[4].mxu0 %vm104_vm0, %v60_v17  ;;  %871 = vmatprep.subr.bf16.mxu1 %v891_v33 }
  0x1b   :  { %826 = vmatprep.mubr.msk.bf16.mxu0 %vm104_vm0, %v61_v18  ;;  %839 = vmatpush3.bf16.msra.mxu0 %v888_v30 }
  0x1c   :  { %840 = vmatprep.subr.bf16.mxu0 %v889_v31 }
  0x1d   :  { %879 = vmatpush3.bf16.msra.mxu1 %v891_v33 }
  0x1e   :  { %872 = vmatprep.subr.bf16.mxu1 %v892_v34 }
  0x1f   :  { %841 = vmatpush3.bf16.msra.mxu0 %v889_v31 }
  0x20   :  { %842 = vmatprep.subr.bf16.mxu0 %v890_v32 }
  0x21   :  { %880 = vmatpush3.bf16.msra.mxu1 %v892_v34 }
  0x22   :  { %827 = vmatmul.mubr.msk.bf16.gmra.mrb[8].mxu0 %vm104_vm0, %v62_v23  ;;  %873 = vmatprep.subr.bf16.mxu1 %v893_v35 }
  0x23   :  { %830 = vmatprep.mubr.msk.bf16.mxu0 %vm104_vm0, %v63_v24  ;;  %843 = vmatpush3.bf16.msra.mxu0 %v890_v32 }
  0x24   :  { %844 = vmatprep.subr.bf16.mxu0 %v891_v33 }
  0x25   :  { %881 = vmatpush3.bf16.msra.mxu1 %v893_v35 }
  0x27   :  { %845 = vmatpush3.bf16.msra.mxu0 %v891_v33 }
  0x28   :  { %846 = vmatprep.subr.bf16.mxu0 %v892_v34 }
  0x2a   :  { %831 = vmatmul.mubr.msk.bf16.gmra.mrb[12].mxu0 %vm104_vm0, %v64_v27 }
  0x2b   :  { %847 = vmatpush3.bf16.msra.mxu0 %v892_v34 }
  0x2c   :  { %848 = vmatprep.subr.bf16.mxu0 %v893_v35 }
  0x2f   :  { %849 = vmatpush3.bf16.msra.mxu0 %v893_v35 }
  0xe5   :  { %v820_v37 = vpop.f32.mrb[0].mxu0 }
  0xe6   :  { %v172_v38 = vadd.f32 %v820_v37, %v1083_v36  ;;  %v163_v39 = vpop.f32.mrb[1].mxu0 }
  0xe7   :  { %v164_v40 = vadd.f32 %v1083_v36, %v163_v39  ;;  %v821_v41 = vpop.f32.mrb[2].mxu0 }
  0xe8   :  { %v680_v42 = vmul.f32 -1.442695, %v172_v38  ;;  %v175_v43 = vadd.f32 %v821_v41, %v1083_v36  ;;  %v166_v44 = vpop.f32.mrb[3].mxu0 }
  0xe9   :  { %v678_v45 = vmul.f32 -1.442695, %v164_v40  ;;  %v167_v46 = vadd.f32 %v1083_v36, %v166_v44 }
  0xea   :  { %894 = vpow2.f32 %v680_v42  ;;  %v681_v47 = vmul.f32 -1.442695, %v175_v43 }
  0xeb   :  { %896 = vpow2.f32 %v678_v45  ;;  %v679_v48 = vmul.f32 -1.442695, %v167_v46 }
  0xec   :  { %898 = vpow2.f32 %v681_v47 }
  0xed   :  { %900 = vpow2.f32 %v679_v48  ;;  %v824_v49 = vpop.f32.mrb[4].mxu0 }
  0xee   :  { %v188_v50 = vadd.f32 %v824_v49, %v1083_v36  ;;  %v179_v51 = vpop.f32.mrb[5].mxu0 }
  0xef   :  { %v180_v52 = vadd.f32 %v1083_v36, %v179_v51  ;;  %v825_v53 = vpop.f32.mrb[6].mxu0 }
  0xf0   :  { %v684_v54 = vmul.f32 -1.442695, %v188_v50  ;;  %v191_v55 = vadd.f32 %v825_v53, %v1083_v36  ;;  %v182_v56 = vpop.f32.mrb[7].mxu0 }
  0xf1   :  { %v682_v57 = vmul.f32 -1.442695, %v180_v52  ;;  %v183_v58 = vadd.f32 %v1083_v36, %v182_v56 }
  0xf2   :  { %902 = vpow2.f32 %v684_v54  ;;  %v685_v59 = vmul.f32 -1.442695, %v191_v55 }
  0xf3   :  { %904 = vpow2.f32 %v682_v57  ;;  %v683_v60 = vmul.f32 -1.442695, %v183_v58 }
  0xf4   :  { %v895_v61 = vpop.eup %894  ;;  %906 = vpow2.f32 %v685_v59 }
  0xf5   :  { %v897_v62 = vpop.eup %896  ;;  %v276_v63 = vadd.f32 1.0, %v895_v61  ;;  %908 = vpow2.f32 %v683_v60  ;;  %v828_v0 = vpop.f32.mrb[8].mxu0 }
  0xf6   :  { %v899_v1 = vpop.eup %898  ;;  %v274_v2 = vadd.f32 1.0, %v897_v62  ;;  %v204_v3 = vadd.f32 %v828_v0, %v1083_v36  ;;  %v195_v4 = vpop.f32.mrb[9].mxu0 }
  0xf7   :  { %v901_v5 = vpop.eup %900  ;;  %910 = vrcp.f32 %v276_v63  ;;  %v277_v6 = vadd.f32 1.0, %v899_v1  ;;  %v196_v7 = vadd.f32 %v1083_v36, %v195_v4  ;;  %v829_v8 = vpop.f32.mrb[10].mxu0 }
  0xf8   :  { %912 = vrcp.f32 %v274_v2  ;;  %v275_v9 = vadd.f32 1.0, %v901_v5  ;;  %v688_v10 = vmul.f32 -1.442695, %v204_v3  ;;  %v207_v11 = vadd.f32 %v829_v8, %v1083_v36  ;;  %v198_v12 = vpop.f32.mrb[11].mxu0 }
  0xf9   :  { %914 = vrcp.f32 %v277_v6  ;;  %v686_v13 = vmul.f32 -1.442695, %v196_v7  ;;  %v199_v14 = vadd.f32 %v1083_v36, %v198_v12 }
  0xfa   :  { %916 = vrcp.f32 %v275_v9  ;;  %v689_v15 = vmul.f32 -1.442695, %v207_v11 }
  0xfb   :  { %918 = vpow2.f32 %v688_v10  ;;  %v687_v16 = vmul.f32 -1.442695, %v199_v14  ;;  %v702_v14 = vld [vmem:[%s1132_s4] ss:$0 sm:$0xff] }
  0xfc   :  { %v903_v17 = vpop.eup %902  ;;  %920 = vpow2.f32 %v686_v13 }
  0xfd   :  { %v905_v18 = vpop.eup %904  ;;  %v280_v19 = vadd.f32 1.0, %v903_v17  ;;  %922 = vpow2.f32 %v689_v15  ;;  %v832_v20 = vpop.f32.mrb[12].mxu0 }
  0xfe   :  { %v907_v21 = vpop.eup %906  ;;  %v278_v22 = vadd.f32 1.0, %v905_v18  ;;  %924 = vpow2.f32 %v687_v16  ;;  %v220_v23 = vadd.f32 %v832_v20, %v1083_v36  ;;  %v211_v24 = vpop.f32.mrb[13].mxu0 }
  0xff   :  { %v909_v25 = vpop.eup %908  ;;  %926 = vrcp.f32 %v280_v19  ;;  %v281_v26 = vadd.f32 1.0, %v907_v21  ;;  %v212_v27 = vadd.f32 %v1083_v36, %v211_v24  ;;  %v833_v28 = vpop.f32.mrb[14].mxu0 }
 0x100   :  { %928 = vrcp.f32 %v278_v22  ;;  %v279_v29 = vadd.f32 1.0, %v909_v25  ;;  %v692_v30 = vmul.f32 -1.442695, %v220_v23  ;;  %v223_v31 = vadd.f32 %v833_v28, %v1083_v36  ;;  %v214_v32 = vpop.f32.mrb[15].mxu0 }
 0x101   :  { %v911_v33 = vpop.eup %910  ;;  %930 = vrcp.f32 %v281_v26  ;;  %v690_v34 = vmul.f32 -1.442695, %v212_v27  ;;  %v215_v35 = vadd.f32 %v1083_v36, %v214_v32 }
 0x102   :  { %v913_v37 = vpop.eup %912  ;;  %932 = vrcp.f32 %v279_v29  ;;  %v693_v38 = vmul.f32 -1.442695, %v223_v31 }
 0x103   :  { %v915_v39 = vpop.eup %914  ;;  %934 = vpow2.f32 %v692_v30  ;;  %v691_v40 = vmul.f32 -1.442695, %v215_v35 }
 0x104   :  { %v917_v41 = vpop.eup %916  ;;  %936 = vpow2.f32 %v690_v34  ;;  %v339_v42 = vpack.c.bf16 %v915_v39, %v911_v33 }
 0x105   :  { %v919_v43 = vpop.eup %918  ;;  %938 = vpow2.f32 %v693_v38  ;;  %v338_v44 = vpack.c.bf16 %v917_v41, %v913_v37 }
 0x106   :  { %v921_v45 = vpop.eup %920  ;;  %v284_v46 = vadd.f32 1.0, %v919_v43  ;;  %940 = vpow2.f32 %v691_v40 }
 0x107   :  { %v923_v47 = vpop.eup %922  ;;  %v282_v48 = vadd.f32 1.0, %v921_v45  ;;  %850 = vmatprep.mubr.bf16.mxu0 %v338_v44 }
 0x108   :  { %v925_v49 = vpop.eup %924  ;;  %942 = vrcp.f32 %v284_v46  ;;  %v285_v36 = vadd.f32 1.0, %v923_v47  ;;  %851 = vmatmul.mubr.bf16.vlgmr.msra.gmra.mrb[16].mxu0 %v339_v42 }
 0x109   :  { %v927_v50 = vpop.eup %926  ;;  %944 = vrcp.f32 %v282_v48  ;;  %v283_v51 = vadd.f32 1.0, %v925_v49 }
 0x10a   :  { %v929_v52 = vpop.eup %928  ;;  %946 = vrcp.f32 %v285_v36 }
 0x10b   :  { %v931_v53 = vpop.eup %930  ;;  %948 = vrcp.f32 %v283_v51 }
 0x10c   :  { %v933_v54 = vpop.eup %932  ;;  %v341_v55 = vpack.c.bf16 %v931_v53, %v927_v50 }
 0x10d   :  { %v935_v56 = vpop.eup %934  ;;  %v340_v57 = vpack.c.bf16 %v933_v54, %v929_v52 }
 0x10e   :  { %v937_v58 = vpop.eup %936  ;;  %v288_v59 = vadd.f32 1.0, %v935_v56 }
 0x10f   :  { %v939_v60 = vpop.eup %938  ;;  %v286_v61 = vadd.f32 1.0, %v937_v58  ;;  %854 = vmatprep.mubr.bf16.mxu1 %v340_v57 }
 0x110   :  { %v941_v62 = vpop.eup %940  ;;  %950 = vrcp.f32 %v288_v59  ;;  %v289_v63 = vadd.f32 1.0, %v939_v60  ;;  %855 = vmatmul.mubr.bf16.vlgmr.msra.gmra.mrb[0].mxu1 %v341_v55 }
 0x111   :  { %952 = vrcp.f32 %v286_v61  ;;  %v287_v0 = vadd.f32 1.0, %v941_v62 }
 0x112   :  { %v943_v1 = vpop.eup %942  ;;  %954 = vrcp.f32 %v289_v63 }
 0x113   :  { %v945_v2 = vpop.eup %944  ;;  %956 = vrcp.f32 %v287_v0 }
 0x114   :  { %v947_v3 = vpop.eup %946 }
 0x115   :  { %v949_v4 = vpop.eup %948  ;;  %v343_v5 = vpack.c.bf16 %v947_v3, %v943_v1 }
 0x116   :  { %v342_v6 = vpack.c.bf16 %v949_v4, %v945_v2 }
 0x118   :  { %858 = vmatprep.mubr.bf16.mxu1 %v342_v6 }
 0x119   :  { %859 = vmatmul.mubr.bf16.gmra.mrb[4].mxu1 %v343_v5 }
 0x11a   :  { %v951_v7 = vpop.eup %950 }
 0x11b   :  { %v953_v8 = vpop.eup %952 }
 0x11c   :  { %v955_v9 = vpop.eup %954 }
 0x11d   :  { %v957_v10 = vpop.eup %956  ;;  %v345_v11 = vpack.c.bf16 %v955_v9, %v951_v7 }
 0x11e   :  { %v344_v12 = vpack.c.bf16 %v957_v10, %v953_v8 }
 0x120   :  { %862 = vmatprep.mubr.bf16.mxu1 %v344_v12 }
 0x121   :  { %863 = vmatmul.mubr.bf16.gmra.mrb[8].mxu1 %v345_v11 }
 0x1db   :  { %v852_v13 = vpop.f32.mrb[16].mxu0 }
 0x1dc   :  { %v444_v15 = vpop.f32.mrb[17].mxu0  ;;  %v567_v17 = vadd.f32 %v852_v13, %v702_v14 }
 0x1dd   :  { %v853_v16 = vpop.f32.mrb[18].mxu0  ;;  %v565_v20 = vadd.f32 %v702_v14, %v444_v15 }
 0x1de   :  { %v568_v18 = vadd.f32 %v853_v16, %v702_v14  ;;  %v447_v19 = vpop.f32.mrb[19].mxu0 }
 0x1df   :  { %v566_v21 = vadd.f32 %v702_v14, %v447_v19 }
 0x1e0   :  { %v743_v22 = vpack.c.bf16 %v568_v18, %v567_v17 }
 0x1e1   :  { %v738_v23 = vpack.c.bf16 %v566_v21, %v565_v20 }
 0x1e2   :  { %775 = vst [vmem:[%s1133_s5 + $0x8] sm:$0xff] %v743_v22  }
 0x1e3   :  { %739 = vst [vmem:[%s1133_s5] sm:$0xff] %v738_v23   ;;  %v856_v24 = vpop.f32.mrb[0].mxu1 }
 0x1e4   :  { %v460_v25 = vpop.f32.mrb[1].mxu1  ;;  %v571_v27 = vadd.f32 %v856_v24, %v702_v14 }
 0x1e5   :  { %v857_v26 = vpop.f32.mrb[2].mxu1  ;;  %v569_v30 = vadd.f32 %v702_v14, %v460_v25 }
 0x1e6   :  { %v572_v28 = vadd.f32 %v857_v26, %v702_v14  ;;  %v463_v29 = vpop.f32.mrb[3].mxu1 }
 0x1e7   :  { %v570_v31 = vadd.f32 %v702_v14, %v463_v29 }
 0x1e8   :  { %v753_v32 = vpack.c.bf16 %v572_v28, %v571_v27 }
 0x1e9   :  { %v748_v33 = vpack.c.bf16 %v570_v31, %v569_v30 }
 0x1ea   :  { %777 = vst [vmem:[%s1133_s5 + $0x18] sm:$0xff] %v753_v32  }
 0x1eb   :  { %776 = vst [vmem:[%s1133_s5 + $0x10] sm:$0xff] %v748_v33  }
 0x1ec   :  { %v860_v34 = vpop.f32.mrb[4].mxu1 }
 0x1ed   :  { %v476_v35 = vpop.f32.mrb[5].mxu1  ;;  %v575_v38 = vadd.f32 %v860_v34, %v702_v14 }
 0x1ee   :  { %v861_v37 = vpop.f32.mrb[6].mxu1  ;;  %v573_v41 = vadd.f32 %v702_v14, %v476_v35 }
 0x1ef   :  { %v576_v39 = vadd.f32 %v861_v37, %v702_v14  ;;  %v479_v40 = vpop.f32.mrb[7].mxu1 }
 0x1f0   :  { %v574_v42 = vadd.f32 %v702_v14, %v479_v40 }
 0x1f1   :  { %v763_v43 = vpack.c.bf16 %v576_v39, %v575_v38 }
 0x1f2   :  { %v758_v44 = vpack.c.bf16 %v574_v42, %v573_v41 }
 0x1f3   :  { %779 = vst [vmem:[%s1133_s5 + $0x28] sm:$0xff] %v763_v43  }
 0x1f4   :  { %778 = vst [vmem:[%s1133_s5 + $0x20] sm:$0xff] %v758_v44   ;;  %v864_v45 = vpop.f32.mrb[8].mxu1 }
 0x1f5   :  { %v492_v46 = vpop.f32.mrb[9].mxu1  ;;  %v579_v48 = vadd.f32 %v864_v45, %v702_v14 }
 0x1f6   :  { %v865_v47 = vpop.f32.mrb[10].mxu1  ;;  %v577_v50 = vadd.f32 %v702_v14, %v492_v46 }
 0x1f7   :  { %v580_v49 = vadd.f32 %v865_v47, %v702_v14  ;;  %v495_v36 = vpop.f32.mrb[11].mxu1 }
 0x1f8   :  { %v578_v51 = vadd.f32 %v702_v14, %v495_v36 }
 0x1f9   :  { %v773_v52 = vpack.c.bf16 %v580_v49, %v579_v48 }
 0x1fa   :  { %v768_v53 = vpack.c.bf16 %v578_v51, %v577_v50 }
 0x1fb   :  { %781 = vst [vmem:[%s1133_s5 + $0x38] sm:$0xff] %v773_v52  }
 0x1fc   :  { %780 = vst [vmem:[%s1133_s5 + $0x30] sm:$0xff] %v768_v53  }

</bundles_post_ra>
